<compile_context>
chip_gen: v5e
topology: v5e:2x2
jax: 0.10.0
libtpu: 0.0.40
codegen_flags: <defaults>
</compile_context>

<pallas_src>
import functools

import jax
import jax.numpy as jnp
from jax.experimental import pallas as pl
from jax.experimental.pallas import tpu as pltpu


# ---------------------------------------------------------------------------
# Expert MLP + weighted accumulation kernel.
# grid = (token_tiles, E, F_tiles); output block resident across (E, F).
# ---------------------------------------------------------------------------
def _moe_expert_kernel(routed_ref,            # SMEM (token_tiles, E) int32
                       x_ref,                 # (tm, H)
                       w1_ref, w3_ref,        # (1, H, tf)
                       w2_ref,                # (1, tf, H)
                       scale_ref,             # (1, tm, 1)
                       o_ref,                 # (tm, H)
                       acc_ref):              # VMEM scratch (tm, H) f32
    t = pl.program_id(0)
    e = pl.program_id(1)
    f = pl.program_id(2)
    n_e = pl.num_programs(1)
    n_f = pl.num_programs(2)

    @pl.when(jnp.logical_and(e == 0, f == 0))
    def _init():
        acc_ref[...] = jnp.zeros_like(acc_ref)

    # Skip all MXU work if no token in this tile routes to expert e.
    @pl.when(routed_ref[t, e] > 0)
    def _compute():
        x = x_ref[...]                           # (tm, H)
        w1 = w1_ref[0]                           # (H, tf)
        w3 = w3_ref[0]                           # (H, tf)
        w2 = w2_ref[0]                           # (tf, H)

        h1 = jnp.dot(x, w1, preferred_element_type=jnp.float32)   # (tm, tf)
        h3 = jnp.dot(x, w3, preferred_element_type=jnp.float32)   # (tm, tf)
        inter = (jax.nn.silu(h1) * h3).astype(w2.dtype)            # bf16 path
        y = jnp.dot(inter, w2, preferred_element_type=jnp.float32)  # (tm, H)

        scale_col = scale_ref[0].astype(jnp.float32)               # (tm, 1)
        acc_ref[...] += y * scale_col

    @pl.when(jnp.logical_and(e == n_e - 1, f == n_f - 1))
    def _store():
        o_ref[...] = acc_ref[...].astype(o_ref.dtype)


def _pick_tm(T):
    """Token-tile size: <=256, multiple of 8, dividing T (or full T)."""
    if T <= 256:
        return T
    for cand in (256, 128, 64, 32, 16, 8):
        if T % cand == 0:
            return cand
    return T


def _pick_tf(F):
    """FFN-tile size: <=512, multiple of 128 (MXU aligned), dividing F."""
    if F <= 512:
        return F
    for cand in (512, 384, 256, 128):
        if F % cand == 0:
            return cand
    return F


def moe_experts(x, w1, w3, w2, scale):
    """x:(T,H), w1/w3:(E,H,F), w2:(E,F,H), scale:(T,E) -> (T,H)."""
    T, H = x.shape
    E, _, F = w1.shape

    tm = _pick_tm(T)
    tf = _pick_tf(F)
    n_t = T // tm
    n_f = F // tf

    # (E, T, 1) so the kernel DMAs exactly one routing-weight column per step.
    scale_t = jnp.transpose(scale, (1, 0))[:, :, None]

    # Per-(token tile, expert) occupancy flags, scalar-prefetched into SMEM.
    # TODO(synk): full token-grouping (sort tokens by expert + scalar-prefetched
    # group offsets in the x/out index_maps) would cut FLOPs from E x to top_k x;
    # here we only skip (tile, expert) pairs with zero routed tokens.
    routed = (scale.reshape(n_t, tm, E) != 0).any(axis=1).astype(jnp.int32)

    grid = (n_t, E, n_f)

    return pl.pallas_call(
        _moe_expert_kernel,
        out_shape=jax.ShapeDtypeStruct((T, H), x.dtype),
        grid_spec=pltpu.PrefetchScalarGridSpec(
            num_scalar_prefetch=1,
            grid=grid,
            in_specs=[
                pl.BlockSpec((tm, H), lambda t, e, f, rt: (t, 0)),      # x
                pl.BlockSpec((1, H, tf), lambda t, e, f, rt: (e, 0, f)),  # w1
                pl.BlockSpec((1, H, tf), lambda t, e, f, rt: (e, 0, f)),  # w3
                pl.BlockSpec((1, tf, H), lambda t, e, f, rt: (e, f, 0)),  # w2
                pl.BlockSpec((1, tm, 1), lambda t, e, f, rt: (e, t, 0)),  # scale
            ],
            out_specs=pl.BlockSpec((tm, H), lambda t, e, f, rt: (t, 0)),
            scratch_shapes=[pltpu.VMEM((tm, H), jnp.float32)],
        ),
        compiler_params=pltpu.CompilerParams(
            # token tiles independent (megacore/dual-TC); expert + F feed the
            # resident accumulator -> must stay "arbitrary" and innermost.
            dimension_semantics=("parallel", "arbitrary", "arbitrary"),
            # Fits the tm<=256 / tf<=512 tile plan with double-buffering and
            # stays under v7x's 64 MiB physical VMEM.
            vmem_limit_bytes=48 * 1024 * 1024,
        ),
    )(routed, x, w1, w3, w2, scale_t)


# ---------------------------------------------------------------------------
# Full MixtralSparseMoeBlock forward
# ---------------------------------------------------------------------------
def mixtral_sparse_moe_block(hidden_states, gate_w, w1, w3, w2, top_k):
    B, S, H = hidden_states.shape
    E = gate_w.shape[1]
    T = B * S
    x = hidden_states.reshape(T, H)

    # Router: tiny matmul (N = E << 128 lanes) — plain JAX so XLA fuses it
    # with the softmax / top-k instead of a lane-starved Pallas kernel.
    router_logits = jnp.dot(
        x, gate_w, preferred_element_type=jnp.float32
    ).astype(hidden_states.dtype)                                    # (T, E)

    routing_weights = jax.nn.softmax(router_logits.astype(jnp.float32), axis=1)
    top_vals, top_idx = jax.lax.top_k(routing_weights, top_k)       # (T, k)
    top_vals = top_vals / jnp.sum(top_vals, axis=-1, keepdims=True)
    top_vals = top_vals.astype(hidden_states.dtype)

    # Dense (T, E) scale matrix: renormalized routing weight if selected, else 0.
    onehot = jax.nn.one_hot(top_idx, E, dtype=hidden_states.dtype)  # (T, k, E)
    scale = jnp.sum(onehot * top_vals[..., None], axis=1)           # (T, E)

    out = moe_experts(x, w1, w3, w2, scale)                         # (T, H)
    return out.reshape(B, S, H), router_logits


# ---------------------------------------------------------------------------
# Plain-JAX reference (sanity check)
# ---------------------------------------------------------------------------
def _reference(hidden_states, gate_w, w1, w3, w2, top_k):
    B, S, H = hidden_states.shape
    E = gate_w.shape[1]
    x = hidden_states.reshape(-1, H)
    logits = jnp.dot(x, gate_w, preferred_element_type=jnp.float32).astype(x.dtype)
    rw = jax.nn.softmax(logits.astype(jnp.float32), axis=1)
    top_vals, top_idx = jax.lax.top_k(rw, top_k)
    top_vals = top_vals / jnp.sum(top_vals, axis=-1, keepdims=True)
    top_vals = top_vals.astype(x.dtype)
    onehot = jax.nn.one_hot(top_idx, E, dtype=x.dtype)
    scale = jnp.sum(onehot * top_vals[..., None], axis=1)           # (T, E)
    acc = jnp.zeros(x.shape, jnp.float32)
    for e in range(E):
        inter = jax.nn.silu(x @ w1[e]) * (x @ w3[e])
        y = inter @ w2[e]
        acc = acc + y.astype(jnp.float32) * scale[:, e:e + 1].astype(jnp.float32)
    return acc.astype(x.dtype).reshape(B, S, H), logits


if __name__ == "__main__":
    # Small config consistent with MixtralConfig fields used by the module.
    batch, seq = 2, 8
    hidden_dim = 32
    ffn_dim = 64
    num_experts = 4
    top_k = 2

    key = jax.random.PRNGKey(0)
    k_x, k_g, k_w1, k_w3, k_w2 = jax.random.split(key, 5)

    x = jax.random.normal(k_x, (batch, seq, hidden_dim), dtype=jnp.float32)
    gate_w = jax.random.normal(k_g, (hidden_dim, num_experts), jnp.float32) * 0.1
    w1 = jax.random.normal(k_w1, (num_experts, hidden_dim, ffn_dim), jnp.float32) * 0.1
    w3 = jax.random.normal(k_w3, (num_experts, hidden_dim, ffn_dim), jnp.float32) * 0.1
    w2 = jax.random.normal(k_w2, (num_experts, ffn_dim, hidden_dim), jnp.float32) * 0.1

    moe_fn = jax.jit(mixtral_sparse_moe_block, static_argnums=(5,))
    out, logits = moe_fn(x, gate_w, w1, w3, w2, top_k)
    out = jax.block_until_ready(out)
    logits = jax.block_until_ready(logits)

    ref_out, ref_logits = _reference(x, gate_w, w1, w3, w2, top_k)
    assert out.shape == (batch, seq, hidden_dim)
    assert logits.shape == (batch * seq, num_experts)
    assert jnp.allclose(out, ref_out, rtol=1e-4, atol=1e-4), float(
        jnp.max(jnp.abs(out - ref_out)))
    assert jnp.allclose(logits, ref_logits, rtol=1e-4, atol=1e-4)

    print("KERNEL_OK")
</pallas_src>

<mosaic_0001>
module attributes {stable_mosaic.version = 11 : i64} {
  func.func @_moe_expert_kernel(%arg0: i32, %arg1: i32, %arg2: i32, %arg3: memref<1x4xi32, #tpu.memory_space<smem>>, %arg4: memref<16x32xf32, #tpu.memory_space<vmem>>, %arg5: memref<1x32x64xf32, #tpu.memory_space<vmem>>, %arg6: memref<1x32x64xf32, #tpu.memory_space<vmem>>, %arg7: memref<1x64x32xf32, #tpu.memory_space<vmem>>, %arg8: memref<1x16x1xf32, #tpu.memory_space<vmem>>, %arg9: memref<16x32xf32, #tpu.memory_space<vmem>>, %arg10: memref<16x32xf32, #tpu.memory_space<vmem>>) attributes {dimension_semantics = [#tpu.dimension_semantics<parallel>, #tpu.dimension_semantics<arbitrary>, #tpu.dimension_semantics<arbitrary>], iteration_bounds = array<i64: 1, 4, 1>, scalar_prefetch = 1 : i64, scratch_operands = 1 : i64, tpu.core_type = #tpu.core_type<tc>, window_params = [{transform_indices = @transform_0, window_bounds = array<i64: 16, 32>}, {transform_indices = @transform_1, window_bounds = array<i64: 1, 32, 64>}, {transform_indices = @transform_2, window_bounds = array<i64: 1, 32, 64>}, {transform_indices = @transform_3, window_bounds = array<i64: 1, 64, 32>}, {transform_indices = @transform_4, window_bounds = array<i64: 1, 16, 1>}, {transform_indices = @transform_5, window_bounds = array<i64: 16, 32>}]} {
    %c0_i32 = arith.constant 0 : i32
    %0 = arith.cmpi eq, %arg1, %c0_i32 : i32
    %c0_i32_0 = arith.constant 0 : i32
    %1 = arith.cmpi eq, %arg2, %c0_i32_0 : i32
    %2 = arith.andi %0, %1 : i1
    %3 = arith.extui %2 : i1 to i32
    %c0_i32_1 = arith.constant 0 : i32
    %4 = arith.cmpi ne, %3, %c0_i32_1 : i32
    scf.if %4 {
      %cst = arith.constant 0.000000e+00 : f32
      %16 = vector.broadcast %cst : f32 to vector<16x32xf32>
      %c0 = arith.constant 0 : index
      %c0_6 = arith.constant 0 : index
      %17 = vector.load %arg10[%c0, %c0_6] : memref<16x32xf32, #tpu.memory_space<vmem>>, vector<16x32xf32>
      tpu.vector_store %arg10[%c0, %c0_6], %16 {strides = array<i32>} : memref<16x32xf32, #tpu.memory_space<vmem>>, vector<16x32xf32>,
    } else {
    }
    %5 = arith.index_cast %arg0 : i32 to index
    %6 = arith.index_cast %arg1 : i32 to index
    %7 = memref.load %arg3[%5, %6] : memref<1x4xi32, #tpu.memory_space<smem>>
    %c0_i32_2 = arith.constant 0 : i32
    %8 = arith.cmpi sgt, %7, %c0_i32_2 : i32
    %9 = arith.extui %8 : i1 to i32
    %c0_i32_3 = arith.constant 0 : i32
    %10 = arith.cmpi ne, %9, %c0_i32_3 : i32
    scf.if %10 {
      %c0 = arith.constant 0 : index
      %c0_6 = arith.constant 0 : index
      %16 = vector.load %arg4[%c0, %c0_6] : memref<16x32xf32, #tpu.memory_space<vmem>>, vector<16x32xf32>
      %c0_7 = arith.constant 0 : index
      %c0_8 = arith.constant 0 : index
      %c0_9 = arith.constant 0 : index
      %17 = vector.load %arg5[%c0_7, %c0_8, %c0_9] : memref<1x32x64xf32, #tpu.memory_space<vmem>>, vector<1x32x64xf32>
      %18 = vector.shape_cast %17 : vector<1x32x64xf32> to vector<32x64xf32>
      %c0_10 = arith.constant 0 : index
      %c0_11 = arith.constant 0 : index
      %c0_12 = arith.constant 0 : index
      %19 = vector.load %arg6[%c0_10, %c0_11, %c0_12] : memref<1x32x64xf32, #tpu.memory_space<vmem>>, vector<1x32x64xf32>
      %20 = vector.shape_cast %19 : vector<1x32x64xf32> to vector<32x64xf32>
      %c0_13 = arith.constant 0 : index
      %c0_14 = arith.constant 0 : index
      %c0_15 = arith.constant 0 : index
      %21 = vector.load %arg7[%c0_13, %c0_14, %c0_15] : memref<1x64x32xf32, #tpu.memory_space<vmem>>, vector<1x64x32xf32>
      %22 = vector.shape_cast %21 : vector<1x64x32xf32> to vector<64x32xf32>
      %cst = arith.constant dense<0.000000e+00> : vector<16x64xf32>
      %23 = tpu.matmul %16, %18, %cst {dimension_numbers = #tpu.dot_dimension_numbers<[1], [0], [0], [1], [0, 0, 1, 1], [], []>} : vector<16x32xf32>, vector<32x64xf32>, vector<16x64xf32> -> vector<16x64xf32>
      %cst_16 = arith.constant dense<0.000000e+00> : vector<16x64xf32>
      %24 = tpu.matmul %16, %20, %cst_16 {dimension_numbers = #tpu.dot_dimension_numbers<[1], [0], [0], [1], [0, 0, 1, 1], [], []>} : vector<16x32xf32>, vector<32x64xf32>, vector<16x64xf32> -> vector<16x64xf32>
      %25 = arith.negf %23 : vector<16x64xf32>
      %26 = math.exp %25 : vector<16x64xf32>
      %cst_17 = arith.constant 1.000000e+00 : f32
      %27 = vector.broadcast %cst_17 : f32 to vector<16x64xf32>
      %28 = arith.addf %27, %26 : vector<16x64xf32>
      %29 = arith.divf %27, %28 : vector<16x64xf32>
      %30 = arith.mulf %23, %29 : vector<16x64xf32>
      %31 = arith.mulf %30, %24 : vector<16x64xf32>
      %cst_18 = arith.constant dense<0.000000e+00> : vector<16x32xf32>
      %32 = tpu.matmul %31, %22, %cst_18 {dimension_numbers = #tpu.dot_dimension_numbers<[1], [0], [0], [1], [0, 0, 1, 1], [], []>} : vector<16x64xf32>, vector<64x32xf32>, vector<16x32xf32> -> vector<16x32xf32>
      %c0_19 = arith.constant 0 : index
      %c0_20 = arith.constant 0 : index
      %c0_21 = arith.constant 0 : index
      %33 = vector.load %arg8[%c0_19, %c0_20, %c0_21] : memref<1x16x1xf32, #tpu.memory_space<vmem>>, vector<1x16x1xf32>
      %34 = vector.shape_cast %33 : vector<1x16x1xf32> to vector<16x1xf32>
      %c0_22 = arith.constant 0 : index
      %c0_23 = arith.constant 0 : index
      %35 = vector.load %arg10[%c0_22, %c0_23] : memref<16x32xf32, #tpu.memory_space<vmem>>, vector<16x32xf32>
      %36 = vector.broadcast %34 : vector<16x1xf32> to vector<16x32xf32>
      %37 = arith.mulf %32, %36 : vector<16x32xf32>
      %38 = arith.addf %35, %37 : vector<16x32xf32>
      %c0_24 = arith.constant 0 : index
      %c0_25 = arith.constant 0 : index
      %39 = vector.load %arg10[%c0_24, %c0_25] : memref<16x32xf32, #tpu.memory_space<vmem>>, vector<16x32xf32>
      tpu.vector_store %arg10[%c0_24, %c0_25], %38 {strides = array<i32>} : memref<16x32xf32, #tpu.memory_space<vmem>>, vector<16x32xf32>,
    } else {
    }
    %c3_i32 = arith.constant 3 : i32
    %11 = arith.cmpi eq, %arg1, %c3_i32 : i32
    %c0_i32_4 = arith.constant 0 : i32
    %12 = arith.cmpi eq, %arg2, %c0_i32_4 : i32
    %13 = arith.andi %11, %12 : i1
    %14 = arith.extui %13 : i1 to i32
    %c0_i32_5 = arith.constant 0 : i32
    %15 = arith.cmpi ne, %14, %c0_i32_5 : i32
    scf.if %15 {
      %c0 = arith.constant 0 : index
      %c0_6 = arith.constant 0 : index
      %16 = vector.load %arg10[%c0, %c0_6] : memref<16x32xf32, #tpu.memory_space<vmem>>, vector<16x32xf32>
      %c0_7 = arith.constant 0 : index
      %c0_8 = arith.constant 0 : index
      %17 = vector.load %arg9[%c0_7, %c0_8] : memref<16x32xf32, #tpu.memory_space<vmem>>, vector<16x32xf32>
      tpu.vector_store %arg9[%c0_7, %c0_8], %16 {strides = array<i32>} : memref<16x32xf32, #tpu.memory_space<vmem>>, vector<16x32xf32>,
    } else {
    }
    return
  }
  func.func @transform_0(%arg0: i32, %arg1: i32, %arg2: i32, %arg3: memref<1x4xi32, #tpu.memory_space<smem>>) -> (i32, i32) {
    %c0_i32 = arith.constant 0 : i32
    %c0_i32_0 = arith.constant 0 : i32
    return %arg0, %c0_i32 : i32, i32
  }
  func.func @transform_1(%arg0: i32, %arg1: i32, %arg2: i32, %arg3: memref<1x4xi32, #tpu.memory_space<smem>>) -> (i32, i32, i32) {
    %c0_i32 = arith.constant 0 : i32
    %c0_i32_0 = arith.constant 0 : i32
    return %arg1, %c0_i32, %arg2 : i32, i32, i32
  }
  func.func @transform_2(%arg0: i32, %arg1: i32, %arg2: i32, %arg3: memref<1x4xi32, #tpu.memory_space<smem>>) -> (i32, i32, i32) {
    %c0_i32 = arith.constant 0 : i32
    %c0_i32_0 = arith.constant 0 : i32
    return %arg1, %c0_i32, %arg2 : i32, i32, i32
  }
  func.func @transform_3(%arg0: i32, %arg1: i32, %arg2: i32, %arg3: memref<1x4xi32, #tpu.memory_space<smem>>) -> (i32, i32, i32) {
    %c0_i32 = arith.constant 0 : i32
    %c0_i32_0 = arith.constant 0 : i32
    return %arg1, %arg2, %c0_i32 : i32, i32, i32
  }
  func.func @transform_4(%arg0: i32, %arg1: i32, %arg2: i32, %arg3: memref<1x4xi32, #tpu.memory_space<smem>>) -> (i32, i32, i32) {
    %c0_i32 = arith.constant 0 : i32
    %c0_i32_0 = arith.constant 0 : i32
    return %arg1, %arg0, %c0_i32 : i32, i32, i32
  }
  func.func @transform_5(%arg0: i32, %arg1: i32, %arg2: i32, %arg3: memref<1x4xi32, #tpu.memory_space<smem>>) -> (i32, i32) {
    %c0_i32 = arith.constant 0 : i32
    %c0_i32_0 = arith.constant 0 : i32
    return %arg0, %c0_i32 : i32, i32
  }
}

</mosaic_0001>

<bundles_post_ra>
// kernel: mixtral_sparse_moe_block.1
= control target key start
LH: loop header
LB: loop body
LE: loop exit
PB: predicated region body
PF: predicated region fallthrough
CT: control target
= control target key end

     0   :  { %s875_s24 = smov [#allocation4]   ;;  %s1006_s0 = inlined_call_operand.vmem [shape: s32[1,4], index: 0, kind: input, shape index: {}]   ;;  %s1007_s1 = inlined_call_operand.vmem [shape: f32[16,32], index: 1, kind: input, shape index: {}]   ;;  %s1008_s2 = inlined_call_operand.vmem [shape: f32[4,32,64], index: 2, kind: input, shape index: {}]   ;;  %s1009_s3 = inlined_call_operand.vmem [shape: f32[4,32,64], index: 3, kind: input, shape index: {}]   ;;  %s1010_s4 = inlined_call_operand.vmem [shape: f32[4,64,32], index: 4, kind: input, shape index: {}]   ;;  %s1011_s5 = inlined_call_operand.vmem [shape: f32[4,16,1], index: 5, kind: input, shape index: {}]   ;;  %s1012_s6 = inlined_call_operand.hbm [shape: f32[16,32], index: 6, kind: output, shape index: {}]  }
   0x1   :  { %s12_s23 = sshll.u32 %s1006_s0, 4  ;;  %s13_s23 = int_to_ptr.vmem [resolvable:$true] %s12_s23 }
   0x2   :  { %15 = dma.vmem_to_smem %s13_s23, 16, %s875_s24, [#allocation3] }
   0x3   :  { %857 = dma.done.wait [#allocation3], 16 }
   0x4   :  { %858 = vsyncadd [#allocation3], 4294967280 }
   0x5   :  { %18 = sfence }
   0x6   :  { %19 = vsyncpa [#allocation6], 0  ;;  %s919_s25 = smov 0   ;;  %s921_s26 = smov 0  }
   0x7   :  { %s923_s27 = smov 0  }
   0x8 LB: > { %s717_s0 = sadd.s32 4294967295, %s873_s27   ;;  %s40_s28 = sadd.s32 1, %s869_s26  ;;  %s873_s27 = sphi %s923_s27, %s25_s27   ;;  %s869_s26 = sphi %s921_s26, %s1014_s26   ;;  %s865_s25 = sphi %s919_s25, %s1013_s25  }
   0x9   : > { %p42_p0 = scmp.ge.s32.totalorder %s40_s28, 4  ;;  %p721_p1 = scmp.ge.s32.totalorder %s873_s27, 1 }
   0xa   : > { %p281_p2 = scmp.lt.s32.totalorder %s873_s27, 5 }
   0xb   : > { %s1016_s28 = smov (%p42_p0, %s40_s28), 0 }
   0xc   : > { %p282_p3 = pnand %p721_p1, %p281_p2 }
   0xd   : > { %p344_p4 = scmp.lt.s32.totalorder (!%p282_p3), %s865_s25, 3  ;;  %p381_p5 = scmp.eq.s32.totalorder (!%p282_p3), %s865_s25, 0 }
   0xe   : > { %285 = sbr.rel (%p282_p3) target bundleno = 366 (0x16e), region = 40 }
  0x13   : > { %s345_s29 = scalar_select %p344_p4, %s865_s25, 3  ;;  %vm387_vm0 = vcmask (%p381_p5), 261120   ;;  %v876_v0 = vmov (%p381_p5), 0.0  }
  0x14   : > { %386 = sbr.rel (!%p381_p5) target bundleno = 25 (0x19), region = 44  ;;  %388 = vst.msk [vmem:[#allocation2] sm:$0xff] (%p381_p5), %vm387_vm0, %v876_v0 }
  0x15   : > { %s746_s30 = sshll.u32 %s345_s29, 5  ;;  %s748_s7 = sshll.u32 %s345_s29, 6  ;;  %389 = vst.msk [vmem:[#allocation2 + $0x8] sm:$0xff] (%p381_p5), %vm387_vm0, %v876_v0 }
  0x16   : > { %s351_s10 = scalar_lea.vmem %s1008_s2, %s746_s30  ;;  %s949_s13 = scalar_lea.vmem %s1009_s3, %s746_s30 }
  0x17   : > { %s954_s16 = scalar_lea.vmem %s1010_s4, %s748_s7  ;;  %s749_s17 = sshll.u32 %s345_s29, 4 }
  0x18   : > { %s959_s20 = scalar_lea.vmem %s1011_s5, %s749_s17 }
  0x19 PF: > { %s390_s21 = sshra.s32 %s865_s25, 7  ;;  %s395_s22 = sand.u32 127, %s865_s25 }
  0x1a   : > { %s731_s23 = sshll.u32 %s390_s21, 7 }
  0x1b   : > { %s396_s24 = sadd.s32 %s731_s23, %s395_s22 }
  0x1c   : > { %s397_s30 = sld [smem:[#allocation4 + %s396_s24]] }
  0x22   : > { %p732_p6 = scmp.le.s32.totalorder %s397_s30, 0 }
  0x24   : > { %401 = sbr.rel (%p732_p6) target bundleno = 352 (0x160), region = 48 }
  0x29   : > { %v407_v1 = vld [vmem:[%s351_s10 + $0x18] sm:$0xff]  ;;  %v406_v2 = vld [vmem:[%s351_s10 + $0x10] sm:$0xff]  ;;  %v405_v3 = vld [vmem:[%s351_s10 + $0x8] sm:$0xff]  ;;  %vm420_vm1 = vcmask 261120   ;;  %v877_v22 = vmov 0   ;;  %vm515_vm6 = vcmask 523264  }
  0x2a   : > { %439 = vmatpush.msra.mxu0 %v407_v1  ;;  %v411_v4 = vld [vmem:[%s949_s13 + $0x18] sm:$0xff]  ;;  %v410_v5 = vld [vmem:[%s949_s13 + $0x10] sm:$0xff]  ;;  %v404_v6 = vld [vmem:[%s351_s10] sm:$0xff]  ;;  %796 = vset.pattern.permute.xlu0 %v877_v22 }
  0x2b   : > { %462 = vmatpush.msra.mxu1 %v411_v4  ;;  %v409_v7 = vld [vmem:[%s949_s13 + $0x8] sm:$0xff]  ;;  %v402_v8 = vld [vmem:[%s1007_s1] sm:$0xff]  ;;  %v419_v11 = vld [vmem:[%s954_s16 + $0x38] sm:$0xff] }
  0x2c   : > { %440 = vmatpush.msra.mxu0 %v406_v2  ;;  %v408_v9 = vld [vmem:[%s949_s13] sm:$0xff]  ;;  %v403_v10 = vld [vmem:[%s1007_s1 + $0x8] sm:$0xff]  ;;  %530 = vmatpush.msra.mxu2 %v419_v11  ;;  %v418_v12 = vld [vmem:[%s954_s16 + $0x30] sm:$0xff] }
  0x2d   : > { %463 = vmatpush.msra.mxu1 %v410_v5  ;;  %752 = vmatpush.msra.mxu3 %v419_v11  ;;  %v417_v13 = vld [vmem:[%s954_s16 + $0x28] sm:$0xff]  ;;  %v416_v14 = vld [vmem:[%s954_s16 + $0x20] sm:$0xff]  ;;  %v415_v15 = vld [vmem:[%s954_s16 + $0x18] sm:$0xff] }
  0x2e   : > { %441 = vmatpush.msra.mxu0 %v405_v3  ;;  %531 = vmatpush.msra.mxu2 %v418_v12  ;;  %v414_v16 = vld [vmem:[%s954_s16 + $0x10] sm:$0xff]  ;;  %v413_v17 = vld [vmem:[%s954_s16 + $0x8] sm:$0xff]  ;;  %v412_v18 = vld [vmem:[%s954_s16] sm:$0xff] }
  0x2f   : > { %464 = vmatpush.msra.mxu1 %v409_v7  ;;  %753 = vmatpush.msra.mxu3 %v418_v12  ;;  %v545_v25 = vld [vmem:[%s959_s20] sm:$0xff]  ;;  %v546_v27 = vld [vmem:[%s959_s20 + $0x8] sm:$0xff] }
  0x30   : > { %442 = vmatpush.msra.mxu0 %v404_v6  ;;  %532 = vmatpush.msra.mxu2 %v417_v13  ;;  %v547_v58 = vld [vmem:[#allocation2] sm:$0xff]  ;;  %v548_v63 = vld [vmem:[#allocation2 + $0x8] sm:$0xff] }
  0x31   : > { %733 = vmatmul.msk.f32.vlgmr.msra.gmra.mxu0 %vm420_vm1, %v402_v8  ;;  %465 = vmatpush.msra.mxu1 %v408_v9 }
  0x32   : > { %735 = vmatmul.msk.f32.vlgmr.msra.gmra.mxu1 %vm420_vm1, %v402_v8  ;;  %754 = vmatpush.msra.mxu3 %v417_v13 }
  0x33   : > { %533 = vmatpush.msra.mxu2 %v416_v14  ;;  %551 = vperm.xlu0 %796, %v545_v25  }
  0x34   : > { %755 = vmatpush.msra.mxu3 %v416_v14 }
  0x35   : > { %534 = vmatpush.msra.mxu2 %v415_v15 }
  0x36   : > { %756 = vmatpush.msra.mxu3 %v415_v15 }
  0x37   : > { %535 = vmatpush.msra.mxu2 %v414_v16 }
  0x38   : > { %757 = vmatpush.msra.mxu3 %v414_v16 }
  0x39   : > { %734 = vmatmul.msk.f32.gmra.mxu0 %vm420_vm1, %v403_v10  ;;  %536 = vmatpush.msra.mxu2 %v413_v17 }
  0x3a   : > { %736 = vmatmul.msk.f32.gmra.mxu1 %vm420_vm1, %v403_v10  ;;  %758 = vmatpush.msra.mxu3 %v413_v17 }
  0x3b   : > { %537 = vmatpush.msra.mxu2 %v412_v18  ;;  %556 = vperm.xlu0 %796, %v546_v27  }
  0x3c   : > { %759 = vmatpush.msra.mxu3 %v412_v18 }
  0xa5   : > { %v552_v56 = vpop.permute.xlu0 %551 }
  0xad   : > { %v557_v61 = vpop.permute.xlu0 %556 }
  0xae   : > { %v444_v19 = vpop.f32.mrf.mxu0 }
  0xaf   : > { %v737_v20 = vmul.f32 -1.442695, %v444_v19  ;;  %v467_v39 = vpop.f32.mrf.mxu1 }
  0xb1   : > { %797 = vpow2.f32 %v737_v20 }
  0xb6   : > { %v447_v21 = vpop.f32.mrf.mxu0 }
  0xb7   : > { %v798_v23 = vpop.eup %797  ;;  %v738_v24 = vmul.f32 -1.442695, %v447_v21  ;;  %v470_v53 = vpop.f32.mrf.mxu1 }
  0xb8   : > { %v479_v26 = vadd.f32 1.0, %v798_v23 }
  0xb9   : > { %799 = vpow2.f32 %v738_v24 }
  0xba   : > { %801 = vrcp.f32 %v479_v26  ;;  %v492_v33 = vand.u32 2147483648, %v479_v26  ;;  %v490_v35 = vand.u32 2147483647, %v479_v26  ;;  %vm486_vm3 = vweird.f32 %v479_v26 }
  0xbc   : > { %v493_v38 = vor.u32 1.1754944e-38, %v492_v33  ;;  %vm491_vm5 = vcmp.eq.f32.partialorder %v490_v35, 8.507059e+37 }
  0xbf   : > { %v800_v28 = vpop.eup %799 }
  0xc0   : > { %v802_v29 = vpop.eup %801  ;;  %v480_v30 = vadd.f32 1.0, %v800_v28 }
  0xc1   : > { %v482_v31 = vmul.f32 %v802_v29, %v479_v26  ;;  %vm487_vm2 = vweird.f32 %v802_v29 }
  0xc2   : > { %803 = vrcp.f32 %v480_v30  ;;  %vm488_vm4 = vmor %vm486_vm3, %vm487_vm2  ;;  %v507_v45 = vand.u32 2147483648, %v480_v30  ;;  %v505_v47 = vand.u32 2147483647, %v480_v30  ;;  %vm501_vm8 = vweird.f32 %v480_v30 }
  0xc3   : > { %v483_v32 = vsub.f32 1.0, %v482_v31 }
  0xc4   : > { %v508_v50 = vor.u32 1.1754944e-38, %v507_v45  ;;  %vm506_vm10 = vcmp.eq.f32.partialorder %v505_v47, 8.507059e+37 }
  0xc5   : > { %v484_v34 = vmul.f32 %v802_v29, %v483_v32 }
  0xc7   : > { %v485_v36 = vadd.f32 %v802_v29, %v484_v34 }
  0xc8   : > { %v804_v37 = vpop.eup %803 }
  0xc9   : > { %v489_v40 = vsel %vm488_vm4, %v802_v29, %v485_v36  ;;  %v497_v41 = vmul.f32 %v804_v37, %v480_v30  ;;  %vm502_vm7 = vweird.f32 %v804_v37 }
  0xca   : > { %v494_v42 = vsel %vm491_vm5, %v493_v38, %v489_v40  ;;  %vm503_vm9 = vmor %vm501_vm8, %vm502_vm7 }
  0xcb   : > { %v511_v43 = vmul.f32 %v494_v42, %v444_v19  ;;  %v498_v44 = vsub.f32 1.0, %v497_v41 }
  0xcd   : > { %v499_v46 = vmul.f32 %v804_v37, %v498_v44  ;;  %v513_v48 = vmul.f32 %v511_v43, %v467_v39 }
  0xcf   : > { %v500_v49 = vadd.f32 %v804_v37, %v499_v46  ;;  %739 = vmatmul.msk.f32.vlgmr.msra.gmra.mxu2 %vm515_vm6, %v513_v48 }
  0xd1   : > { %v504_v51 = vsel %vm503_vm9, %v804_v37, %v500_v49 }
  0xd2   : > { %v509_v52 = vsel %vm506_vm10, %v508_v50, %v504_v51 }
  0xd3   : > { %v512_v54 = vmul.f32 %v509_v52, %v447_v21 }
  0xd5   : > { %v514_v55 = vmul.f32 %v512_v54, %v470_v53 }
  0xd7   : > { %740 = vmatmul.msk.f32.vlgmr.msra.gmra.mxu3 %vm515_vm6, %v514_v55 }
 0x152   : > { %v539_v57 = vpop.f32.mrf.mxu2 }
 0x153   : > { %v559_v59 = vmul.f32 %v552_v56, %v539_v57 }
 0x155   : > { %v561_v60 = vadd.f32 %v559_v59, %v547_v58 }
 0x157   : > { %563 = vst.msk [vmem:[#allocation2] sm:$0xff] %vm420_vm1, %v561_v60 }
 0x15a   : > { %v542_v62 = vpop.f32.mrf.mxu3 }
 0x15b   : > { %v560_v0 = vmul.f32 %v557_v61, %v542_v62 }
 0x15d   : > { %v562_v1 = vadd.f32 %v560_v0, %v548_v63 }
 0x15f   : > { %564 = vst.msk [vmem:[#allocation2 + $0x8] sm:$0xff] %vm420_vm1, %v562_v1 }
 0x160 PF: > { %p565_p7 = scmp.eq.s32.totalorder %s865_s25, 3 }
 0x161   : > { %v570_v2 = vld [vmem:[#allocation2] sm:$0xff] (%p565_p7)  ;;  %vm572_vm11 = vcmask (%p565_p7), 261120  }
 0x162   : > { %569 = sbr.rel (!%p565_p7) target bundleno = 360 (0x168), region = 52  ;;  %573 = vst.msk [vmem:[#allocation5] sm:$0xff] (%p565_p7), %vm572_vm11, %v570_v2 }
 0x166   : > { %v571_v3 = vld [vmem:[#allocation2 + $0x8] sm:$0xff] (%p565_p7) }
 0x167   : > { %574 = vst.msk [vmem:[#allocation5 + $0x8] sm:$0xff] %vm572_vm11, %v571_v3 }
 0x168 PF: > { %p764_p8 = scmp.eq.s32.totalorder %s717_s0, 3  ;;  %s585_s12 = sshll.u32 %s1012_s6, 4  ;;  %s586_s12 = int_to_ptr.hbm [resolvable:$true] %s585_s12 }
 0x169   : > { %s878_s13 = smov [#allocation5]   ;;  %s879_s15 = smov 128  }
 0x16a   : > { %s583_s14 = sshll.u32 %s878_s13, 4  ;;  %s880_s25 = smov 8   ;;  %s584_s14 = int_to_ptr.vmem [resolvable:$true] %s583_s14 }
 0x16b   : > { %761 = dma.vmem_to_hbm [thread:$0]  (%p764_p8), %s584_s14, 256, %s586_s12, [#allocation6], %s879_s15, %s879_s15, %s880_s25  }
 0x16c   : > { %860 = dma.done.wait (%p764_p8), [#allocation6], 256  }
 0x16d   : > { %862 = vsyncadd (%p764_p8), [#allocation6], 4294967040 }
 0x16e PF: > { %s25_s27 = sadd.s32 1, %s873_s27   ;;  %s1013_s25 = smov %s869_s26 }
 0x16f   : > { %p22_p9 = scmp.ge.s32.totalorder %s25_s27, 6   ;;  %s1014_s26 = smov %s1016_s28 }
 0x171   :  { %24 = sbr.rel (!%p22_p9) target bundleno = 8 (0x8), region = 92 }
 0x176   :  { %602 = vsyncpa [#allocation6], 1 }
 0x177   :  { %604 = vsyncpa [#allocation6 + $0x1], 1 }

</bundles_post_ra>
